<compile_context>
chip_gen: v6e
topology: v6e:2x2x1
jax: 0.10.0
libtpu: 0.0.40
codegen_flags: <defaults>
</compile_context>

<pallas_src>
import functools
import math

import jax
import jax.numpy as jnp
import numpy as np
from jax.experimental import pallas as pl
from jax.experimental.pallas import tpu as pltpu


def _ceil_div(a, b):
    return -(-a // b)


def _convt_kernel(x_ref, w_ref, b_ref, o_ref, patch_ref, *,
                  tap_offsets, row_tile, cin):
    """One (batch, row-tile) grid step.

    x_ref:     (1, rows_in, Cin)    flattened, spatially padded input (resident per batch)
    w_ref:     (T*Cin, Cpad)        phase-stacked weight (constant across the grid)
    b_ref:     (1, Cpad)            phase-stacked bias (+ mtl bias)
    o_ref:     (1, row_tile, Cpad)  lane-dense output tile
    patch_ref: (row_tile, T*Cin)    VMEM im2col scratch
    """
    t = pl.program_id(1)
    base = pl.multiple_of(t * row_tile, 8)            # row_tile is a multiple of 8

    # Build the im2col patch matrix in VMEM: one constant flat offset per tap.
    for idx, off in enumerate(tap_offsets):
        patch_ref[:, idx * cin:(idx + 1) * cin] = (
            x_ref[0, pl.ds(base + off, row_tile), :])

    # Single fused MXU matmul over all taps, one bias add, lane-dense store.
    acc = jnp.dot(patch_ref[...], w_ref[...], preferred_element_type=jnp.float32)
    o_ref[0] = (acc + b_ref[...]).astype(o_ref.dtype)


def conv_transpose2d_mtl(x, weight, mtl_weight, bias, mtl_bias,
                         stride=(1, 1), padding=(0, 0),
                         output_padding=(0, 0), dilation=(1, 1),
                         *, row_tile_target=1024):
    """Forward of ConvTranspose2dMtl (groups=1).

    x:          (N, Cin, H, W)       NCHW, like PyTorch
    weight:     (Cin, Cout, KH, KW)  transposed-conv layout
    mtl_weight: (Cin, Cout, 1, 1)
    bias:       (Cout,) or None
    mtl_bias:   (Cout,) or None
    returns     (N, Cout, OH, OW)    NCHW
    """
    N, Cin, H, W = x.shape
    _, Cout, KH, KW = weight.shape
    s_h, s_w = stride
    p_h, p_w = padding
    op_h, op_w = output_padding
    d_h, d_w = dilation
    # TODO(synk): groups > 1 not implemented.

    # --- meta-transfer scaling of the frozen params (cheap elementwise glue) ---
    new_w = weight * mtl_weight                                   # (Cin, Cout, KH, KW)
    new_b = (bias + mtl_bias) if bias is not None else jnp.zeros((Cout,), x.dtype)

    OH = (H - 1) * s_h - 2 * p_h + d_h * (KH - 1) + op_h + 1
    OW = (W - 1) * s_w - 2 * p_w + d_w * (KW - 1) + op_w + 1
    QH = _ceil_div(OH, s_h)                                       # output rows per phase
    QW = _ceil_div(OW, s_w)

    # --- static phase decomposition (per spatial dim) -------------------------
    # oh = ih*s - p + kh*d.  Each tap kh contributes to exactly one output phase
    # ph = (kh*d - p) mod s, at input row ih = qh + shift,
    # shift = (ph + p - kh*d) // s, where qh = oh // s.
    def _phase_taps(K, s, p, d):
        taps = []
        for k in range(K):
            ph = (k * d - p) % s
            taps.append((k, ph, (ph + p - k * d) // s))
        shifts = sorted({sh for _, _, sh in taps})
        return taps, shifts

    taps_h, U_h = _phase_taps(KH, s_h, p_h, d_h)
    taps_w, U_w = _phase_taps(KW, s_w, p_w, d_w)
    T_h, T_w = len(U_h), len(U_w)
    L_h, L_w = max(0, -U_h[0]), max(0, -U_w[0])       # leading zero pad (handles p > d*(K-1))
    Hp = max(L_h + H, QH + U_h[-1] + L_h)             # padded input height
    Wp = max(L_w + W, QW + U_w[-1] + L_w)             # padded input width

    # --- phase-stacked weight / bias: phases live on the output-channel axis,
    #     padded up to a multiple of 128 lanes (lane-dense output) ------------
    Cbig = s_h * s_w * Cout
    Cpad = _ceil_div(Cbig, 128) * 128
    a_of = {sh: i for i, sh in enumerate(U_h)}
    b_of = {sh: i for i, sh in enumerate(U_w)}
    w_big = jnp.zeros((T_h, T_w, Cin, s_h, s_w, Cout), new_w.dtype)
    for kh, ph, sh in taps_h:
        for kw, pw, sw in taps_w:
            w_big = w_big.at[a_of[sh], b_of[sw], :, ph, pw, :].set(new_w[:, :, kh, kw])
    Kc = T_h * T_w * Cin
    w2 = jnp.pad(w_big.reshape(Kc, Cbig), ((0, 0), (0, Cpad - Cbig)))
    b2 = jnp.pad(jnp.tile(new_b, s_h * s_w), (0, Cpad - Cbig)).reshape(1, Cpad)

    # --- flattened, spatially padded input (NO zero-dilation) -----------------
    x_nhwc = jnp.transpose(x, (0, 2, 3, 1))
    xp = jnp.pad(x_nhwc, ((0, 0), (L_h, Hp - L_h - H), (L_w, Wp - L_w - W), (0, 0)))
    x_flat = xp.reshape(N, Hp * Wp, Cin)

    # Every tap becomes a constant row offset into the flattened input.  Output
    # rows are indexed f = qh*Wp + qw (the few qw >= QW junk columns are cropped
    # in the wrapper) so a tap read is just x_flat[f + offset].
    tap_offsets = tuple((uh + L_h) * Wp + (uw + L_w) for uh in U_h for uw in U_w)
    max_off = max(tap_offsets)

    # --- output-row tiling -----------------------------------------------------
    rows_logical = QH * Wp
    num_tiles = max(1, _ceil_div(rows_logical, row_tile_target))
    row_tile = _ceil_div(_ceil_div(rows_logical, num_tiles), 8) * 8
    rows_out = row_tile * num_tiles
    rows_in = max(Hp * Wp, rows_out + max_off)
    x_flat = jnp.pad(x_flat, ((0, 0), (0, rows_in - Hp * Wp), (0, 0)))

    kernel = functools.partial(_convt_kernel, tap_offsets=tap_offsets,
                               row_tile=row_tile, cin=Cin)

    out = pl.pallas_call(
        kernel,
        out_shape=jax.ShapeDtypeStruct((N, rows_out, Cpad), x.dtype),
        grid_spec=pltpu.PrefetchScalarGridSpec(
            num_scalar_prefetch=0,
            grid=(N, num_tiles),
            in_specs=[
                # Whole (small, un-dilated) flattened image per batch element;
                # constant block index across row tiles => Pallas does not
                # re-DMA it (same for the weight / bias specs below).
                pl.BlockSpec((1, rows_in, Cin), lambda n, t: (n, 0, 0)),
                pl.BlockSpec((Kc, Cpad), lambda n, t: (0, 0)),
                pl.BlockSpec((1, Cpad), lambda n, t: (0, 0)),
            ],
            out_specs=pl.BlockSpec((1, row_tile, Cpad), lambda n, t: (n, t, 0)),
            scratch_shapes=[pltpu.VMEM((row_tile, Kc), x.dtype)],
        ),
        compiler_params=pltpu.CompilerParams(
            dimension_semantics=("parallel", "parallel"),
            vmem_limit_bytes=48 * 1024 * 1024,
        ),
    )(x_flat, w2, b2)

    # --- un-stack phases (pixel shuffle) and crop ------------------------------
    out = out[:, :rows_logical, :Cbig].reshape(N, QH, Wp, Cbig)[:, :, :QW, :]
    out = out.reshape(N, QH, QW, s_h, s_w, Cout)
    out = out.transpose(0, 1, 3, 2, 4, 5).reshape(N, QH * s_h, QW * s_w, Cout)
    out = out[:, :OH, :OW, :]
    return jnp.transpose(out, (0, 3, 1, 2))                      # back to NCHW


if __name__ == "__main__":
    # Module config: ConvTranspose2dMtl(4, 8, kernel_size=3, stride=2,
    #                                   padding=1, output_padding=1, bias=True)
    N, Cin, H, W = 2, 4, 16, 16
    Cout, K = 8, 3
    stride = (2, 2)
    padding = (1, 1)
    output_padding = (1, 1)
    dilation = (1, 1)

    # Deterministic parameter init (mirrors reset_parameters()).
    stdv = 1.0 / math.sqrt(Cin * K * K)
    key = jax.random.PRNGKey(0)
    k_w, k_b, k_x = jax.random.split(key, 3)
    weight = jax.random.uniform(k_w, (Cin, Cout, K, K), jnp.float32, -stdv, stdv)
    mtl_weight = jnp.ones((Cin, Cout, 1, 1), jnp.float32)
    bias = jax.random.uniform(k_b, (Cout,), jnp.float32, -stdv, stdv)
    mtl_bias = jnp.zeros((Cout,), jnp.float32)
    x = jax.random.normal(k_x, (N, Cin, H, W), jnp.float32)

    out = conv_transpose2d_mtl(x, weight, mtl_weight, bias, mtl_bias,
                               stride, padding, output_padding, dilation,
                               row_tile_target=256)   # exercises the multi-tile path
    out = jax.block_until_ready(out)

    # Pure-JAX reference (XLA transposed conv via lhs_dilation).
    new_w = weight * mtl_weight
    ref = jax.lax.conv_general_dilated(
        x,
        jnp.transpose(jnp.flip(new_w, (2, 3)), (1, 0, 2, 3)),    # (Cout, Cin, KH, KW)
        window_strides=(1, 1),
        padding=[(dilation[0] * (K - 1) - padding[0],
                  dilation[0] * (K - 1) - padding[0] + output_padding[0]),
                 (dilation[1] * (K - 1) - padding[1],
                  dilation[1] * (K - 1) - padding[1] + output_padding[1])],
        lhs_dilation=stride,
        rhs_dilation=dilation,
        dimension_numbers=("NCHW", "OIHW", "NCHW"),
    ) + (bias + mtl_bias).reshape(1, -1, 1, 1)

    assert out.shape == ref.shape == (N, Cout, 32, 32)
    np.testing.assert_allclose(np.asarray(out), np.asarray(ref), rtol=1e-5, atol=1e-4)
    print("KERNEL_OK")
</pallas_src>

<mosaic_0001>
module attributes {stable_mosaic.version = 11 : i64} {
  func.func @_convt_kernel(%arg0: i32, %arg1: i32, %arg2: memref<1x290x4xf32, #tpu.memory_space<vmem>>, %arg3: memref<16x128xf32, #tpu.memory_space<vmem>>, %arg4: memref<1x128xf32, #tpu.memory_space<vmem>>, %arg5: memref<1x136x128xf32, #tpu.memory_space<vmem>>, %arg6: memref<136x16xf32, #tpu.memory_space<vmem>>) attributes {dimension_semantics = [#tpu.dimension_semantics<parallel>, #tpu.dimension_semantics<parallel>], iteration_bounds = array<i64: 2, 2>, scalar_prefetch = 0 : i64, scratch_operands = 1 : i64, tpu.core_type = #tpu.core_type<tc>, window_params = [{transform_indices = @transform_0, window_bounds = array<i64: 1, 290, 4>}, {pipeline_mode = #tpu.pipeline_mode<synchronous>, transform_indices = @transform_1, window_bounds = array<i64: 16, 128>}, {pipeline_mode = #tpu.pipeline_mode<synchronous>, transform_indices = @transform_2, window_bounds = array<i64: 1, 128>}, {transform_indices = @transform_3, window_bounds = array<i64: 1, 136, 128>}]} {
    %c136_i32 = arith.constant 136 : i32
    %0 = arith.muli %arg1, %c136_i32 : i32
    %1 = tpu.assume_multiple %0, 8 : i32
    %c0_i32 = arith.constant 0 : i32
    %2 = arith.addi %1, %c0_i32 : i32
    %c0 = arith.constant 0 : index
    %3 = arith.index_cast %2 : i32 to index
    %c0_0 = arith.constant 0 : index
    %4 = vector.load %arg2[%c0, %3, %c0_0] : memref<1x290x4xf32, #tpu.memory_space<vmem>>, vector<1x136x4xf32>
    %5 = vector.shape_cast %4 : vector<1x136x4xf32> to vector<136x4xf32>
    %c0_1 = arith.constant 0 : index
    %c0_2 = arith.constant 0 : index
    %6 = vector.load %arg6[%c0_1, %c0_2] : memref<136x16xf32, #tpu.memory_space<vmem>>, vector<136x4xf32>
    tpu.vector_store %arg6[%c0_1, %c0_2], %5 {strides = array<i32>} : memref<136x16xf32, #tpu.memory_space<vmem>>, vector<136x4xf32>,
    %c1_i32 = arith.constant 1 : i32
    %7 = arith.addi %1, %c1_i32 : i32
    %c0_3 = arith.constant 0 : index
    %8 = arith.index_cast %7 : i32 to index
    %c0_4 = arith.constant 0 : index
    %9 = vector.load %arg2[%c0_3, %8, %c0_4] : memref<1x290x4xf32, #tpu.memory_space<vmem>>, vector<1x136x4xf32>
    %10 = vector.shape_cast %9 : vector<1x136x4xf32> to vector<136x4xf32>
    %c0_5 = arith.constant 0 : index
    %c4 = arith.constant 4 : index
    %11 = vector.load %arg6[%c0_5, %c4] : memref<136x16xf32, #tpu.memory_space<vmem>>, vector<136x4xf32>
    tpu.vector_store %arg6[%c0_5, %c4], %10 {strides = array<i32>} : memref<136x16xf32, #tpu.memory_space<vmem>>, vector<136x4xf32>,
    %c17_i32 = arith.constant 17 : i32
    %12 = arith.addi %1, %c17_i32 : i32
    %c0_6 = arith.constant 0 : index
    %13 = arith.index_cast %12 : i32 to index
    %c0_7 = arith.constant 0 : index
    %14 = vector.load %arg2[%c0_6, %13, %c0_7] : memref<1x290x4xf32, #tpu.memory_space<vmem>>, vector<1x136x4xf32>
    %15 = vector.shape_cast %14 : vector<1x136x4xf32> to vector<136x4xf32>
    %c0_8 = arith.constant 0 : index
    %c8 = arith.constant 8 : index
    %16 = vector.load %arg6[%c0_8, %c8] : memref<136x16xf32, #tpu.memory_space<vmem>>, vector<136x4xf32>
    tpu.vector_store %arg6[%c0_8, %c8], %15 {strides = array<i32>} : memref<136x16xf32, #tpu.memory_space<vmem>>, vector<136x4xf32>,
    %c18_i32 = arith.constant 18 : i32
    %17 = arith.addi %1, %c18_i32 : i32
    %c0_9 = arith.constant 0 : index
    %18 = arith.index_cast %17 : i32 to index
    %c0_10 = arith.constant 0 : index
    %19 = vector.load %arg2[%c0_9, %18, %c0_10] : memref<1x290x4xf32, #tpu.memory_space<vmem>>, vector<1x136x4xf32>
    %20 = vector.shape_cast %19 : vector<1x136x4xf32> to vector<136x4xf32>
    %c0_11 = arith.constant 0 : index
    %c12 = arith.constant 12 : index
    %21 = vector.load %arg6[%c0_11, %c12] : memref<136x16xf32, #tpu.memory_space<vmem>>, vector<136x4xf32>
    tpu.vector_store %arg6[%c0_11, %c12], %20 {strides = array<i32>} : memref<136x16xf32, #tpu.memory_space<vmem>>, vector<136x4xf32>,
    %c0_12 = arith.constant 0 : index
    %c0_13 = arith.constant 0 : index
    %22 = vector.load %arg6[%c0_12, %c0_13] : memref<136x16xf32, #tpu.memory_space<vmem>>, vector<136x16xf32>
    %c0_14 = arith.constant 0 : index
    %c0_15 = arith.constant 0 : index
    %23 = vector.load %arg3[%c0_14, %c0_15] : memref<16x128xf32, #tpu.memory_space<vmem>>, vector<16x128xf32>
    %cst = arith.constant dense<0.000000e+00> : vector<136x128xf32>
    %24 = tpu.matmul %22, %23, %cst {dimension_numbers = #tpu.dot_dimension_numbers<[1], [0], [0], [1], [0, 0, 1, 1], [], []>} : vector<136x16xf32>, vector<16x128xf32>, vector<136x128xf32> -> vector<136x128xf32>
    %c0_16 = arith.constant 0 : index
    %c0_17 = arith.constant 0 : index
    %25 = vector.load %arg4[%c0_16, %c0_17] : memref<1x128xf32, #tpu.memory_space<vmem>>, vector<1x128xf32>
    %26 = vector.broadcast %25 : vector<1x128xf32> to vector<136x128xf32>
    %27 = arith.addf %24, %26 : vector<136x128xf32>
    %c0_18 = arith.constant 0 : index
    %c0_19 = arith.constant 0 : index
    %c0_20 = arith.constant 0 : index
    %28 = vector.load %arg5[%c0_18, %c0_19, %c0_20] : memref<1x136x128xf32, #tpu.memory_space<vmem>>, vector<1x136x128xf32>
    %29 = vector.shape_cast %28 : vector<1x136x128xf32> to vector<136x128xf32>
    %30 = vector.shape_cast %27 : vector<136x128xf32> to vector<1x136x128xf32>
    tpu.vector_store %arg5[%c0_18, %c0_19, %c0_20], %30 {strides = array<i32>} : memref<1x136x128xf32, #tpu.memory_space<vmem>>, vector<1x136x128xf32>,
    return
  }
  func.func @transform_0(%arg0: i32, %arg1: i32) -> (i32, i32, i32) {
    %c0_i32 = arith.constant 0 : i32
    %c0_i32_0 = arith.constant 0 : i32
    %c0_i32_1 = arith.constant 0 : i32
    return %arg0, %c0_i32, %c0_i32_0 : i32, i32, i32
  }
  func.func @transform_1(%arg0: i32, %arg1: i32) -> (i32, i32) {
    %c0_i32 = arith.constant 0 : i32
    %c0_i32_0 = arith.constant 0 : i32
    %c0_i32_1 = arith.constant 0 : i32
    return %c0_i32, %c0_i32_0 : i32, i32
  }
  func.func @transform_2(%arg0: i32, %arg1: i32) -> (i32, i32) {
    %c0_i32 = arith.constant 0 : i32
    %c0_i32_0 = arith.constant 0 : i32
    %c0_i32_1 = arith.constant 0 : i32
    return %c0_i32, %c0_i32_0 : i32, i32
  }
  func.func @transform_3(%arg0: i32, %arg1: i32) -> (i32, i32, i32) {
    %c0_i32 = arith.constant 0 : i32
    %c0_i32_0 = arith.constant 0 : i32
    return %arg0, %arg1, %c0_i32 : i32, i32, i32
  }
}

</mosaic_0001>

<bundles_post_ra>
// kernel: tpu_custom_call.1
= control target key start
LH: loop header
LB: loop body
LE: loop exit
PB: predicated region body
PF: predicated region fallthrough
CT: control target
= control target key end

     0   :  { %8 = vsyncpa [#allocation4], 0  ;;  %s1669_s0 = inlined_call_operand.vmem [shape: f32[2,290,4], index: 0, kind: input, shape index: {}]   ;;  %s1670_s1 = inlined_call_operand.vmem [shape: f32[16,128], index: 1, kind: input, shape index: {}]   ;;  %s1671_s2 = inlined_call_operand.vmem [shape: f32[1,128], index: 2, kind: input, shape index: {}]   ;;  %s1672_s3 = inlined_call_operand.hbm [shape: f32[2,272,128], index: 3, kind: output, shape index: {}]  }
   0x1   :  { %10 = vsyncpa [#allocation4 + $0x1], 0  ;;  %s1241_s12 = smov 0   ;;  %s1243_s13 = smov 0  }
   0x2   :  { %s1245_s14 = smov 0   ;;  %s1247_s15 = smov 0  }
   0x3   :  { %s1249_s16 = smov 0   ;;  %s1251_s17 = smov 0  }
   0x4   :  { %s1253_s18 = smov 0   ;;  %s1255_s19 = smov 0  }
   0x5 LB: > { %s884_s20 = sadd.s32 4294967295, %s1212_s19   ;;  %s885_s21 = sadd.s32 4294967294, %s1212_s19   ;;  %s1212_s19 = sphi %s1255_s19, %s16_s19   ;;  %s1208_s18 = sphi %s1253_s18, %s1681_s18   ;;  %s1204_s17 = sphi %s1251_s17, %s1680_s17   ;;  %s1200_s16 = sphi %s1249_s16, %s1679_s16   ;;  %s1196_s15 = sphi %s1247_s15, %s1678_s15   ;;  %s1192_s14 = sphi %s1245_s14, %s1677_s14   ;;  %s1188_s13 = sphi %s1243_s13, %s1676_s13   ;;  %s1184_s12 = sphi %s1241_s12, %s1675_s12  }
   0x6   : > { %s25_s22 = sadd.s32 1, %s1204_s17  ;;  %s28_s23 = sadd.s32 1, %s1208_s18 }
   0x7   : > { %p26_p0 = scmp.ge.s32.totalorder %s25_s22, 2  ;;  %p115_p1 = scmp.ne.s32.totalorder %s1192_s14, %s1188_s13 }
   0x8   : > { %p116_p2 = scmp.eq.s32.totalorder %s884_s20, 3  ;;  %p121_p5 = scmp.ne.s32.totalorder %s1188_s13, %s1184_s12 }
   0x9   : > { %s1683_s22 = smov (%p26_p0, %s25_s22), 0  ;;  %s1685_s23 = smov (!%p26_p0, %s28_s23), %s1208_s18 }
   0xa   : > { %s101_s24 = ssub.s32 %s1204_s17, %s1683_s22  ;;  %p1292_p3 = por %p116_p2, %p115_p1 }
   0xb   : > { %p30_p4 = scmp.ge.s32.totalorder %s1685_s23, 2  ;;  %p122_p6 = scmp.eq.s32.totalorder %s885_s21, 3 }
   0xc   : > { %p888_p7 = scmp.ge.s32.totalorder %s1212_s19, 1  ;;  %p154_p9 = scmp.lt.s32.totalorder %s1212_s19, 5 }
   0xd   : > { %s1687_s23 = smov (%p30_p4, %s1685_s23), 0  ;;  %p1301_p8 = por %p122_p6, %p121_p5 }
   0xe   : > { %s100_s27 = ssub.s32 %s1208_s18, %s1687_s23  ;;  %s105_s28 = sadd.s32 1, %s1192_s14 }
   0xf   : > { %s102_s29 = sor.u32 %s101_s24, %s100_s27  ;;  %p155_p10 = pnand %p888_p7, %p154_p9 }
  0x10   : > { %p103_p11 = scmp.eq.s32.totalorder %s102_s29, 0  ;;  %p178_p12 = scmp.lt.s32.totalorder (!%p155_p10), %s1200_s16, 1 }
  0x11   : > { %158 = sbr.rel (%p155_p10) target bundleno = 461 (0x1cd), region = 32  ;;  %s1216_s27 = smov (!%p155_p10), 4  }
  0x12   : > { %s1310_s30 = scalar_select %p103_p11, %s1192_s14, %s105_s28  }
  0x13   : > { %s184_s5 = smul.u32 (!%p155_p10), 136, %s1196_s15  ;;  %s1217_s28 = smov (!%p155_p10), 12  }
  0x14   : > { %s1218_s29 = smov (!%p155_p10), 8   ;;  %s789_s9 = smul.u32 (!%p155_p10), 17, %s1196_s15 }
  0x15   : > { %s1042_s10 = smul.u32 (!%p155_p10), 34, %s1200_s16 }
  0x16   : > { %s179_s4 = scalar_select %p178_p12, %s1200_s16, 1  ;;  %v554_v0 = vld [vmem:[%s1670_s1 + $0x8] sm:$0xff]  ;;  %v1214_v1 = vmov 0.0   ;;  %v553_v2 = vld [vmem:[%s1670_s1] sm:$0xff]  ;;  %vm1215_vm0 = vmmov 0   ;;  %vm203_vm1 = vcmask 31744  }
  0x17   : > { %981 = vmatprep.subr.mxu0 %v1214_v1  ;;  %1036 = vmatprep.subr.mxu1 %v1214_v1  ;;  %vm308_vm2 = vcmask 64544   ;;  %vm413_vm3 = vcmask 97344   ;;  %vm518_vm4 = vcmask 130144   ;;  %vm562_vm5 = vcmask 130048  }
  0x18   : > { %s1041_s6 = smul.u32 296, %s179_s4  ;;  %982 = vmatpush3.msra.mxu0 %v554_v0  ;;  %1038 = vmatpush3.msra.mxu1 %v554_v0  ;;  %s175_s4 = sand.u32 1, %s1188_s13  }
  0x19   : > { %983 = vmatprep.subr.mxu0 %v1214_v1  ;;  %1037 = vmatprep.subr.mxu1 %v1214_v1 }
  0x1a   : > { %s182_s11 = scalar_lea.vmem %s1669_s0, %s1041_s6  ;;  %984 = vmatpush3.msra.mxu0 %v553_v2  ;;  %985 = vmatprep.mubr.msk.f32.mxu0 %vm1215_vm0, %v1214_v1 }
  0x1b   : > { %s1323_s20 = scalar_lea.vmem %s182_s11, %s184_s5  ;;  %1039 = vmatpush3.msra.mxu1 %v553_v2  ;;  %1012 = vmatprep.mubr.msk.f32.mxu1 %vm1215_vm0, %v1214_v1  ;;  %s1040_s5 = smul.u32 136, %s175_s4 }
  0x1c   : > { %v890_v3 = vld [vmem:[%s1323_s20 + $0x1] sm:$0xff]  ;;  %v924_v4 = vld [vmem:[%s1323_s20 + $0x12] sm:$0xff]  ;;  %v891_v6 = vld [vmem:[%s1323_s20 + $0x9] sm:$0xff]  ;;  %s794_s11 = sadd.s32 %s1042_s10, %s789_s9 }
  0x1d   : > { %257 = vrot.lane.b32.xlu0 %v890_v3, %s1216_s27  ;;  %467 = vrot.lane.b32.xlu1 %v924_v4, %s1217_s28  ;;  %v907_v5 = vld [vmem:[%s1323_s20 + $0x11] sm:$0xff]  ;;  %v1343_v7 = vld [vmem:[%s1323_s20 + $0x49] sm:$0xff]  ;;  %s1570_s8 = scalar_lea.vmem [#allocation3], %s1040_s5  ;;  %s959_s21 = sshll.u32 %s794_s11, 7 }
  0x1e   : > { %v908_v8 = vld [vmem:[%s1323_s20 + $0x19] sm:$0xff]  ;;  %v187_v13 = vld [vmem:[%s1323_s20 + $0x8] sm:$0xff]  ;;  %v188_v15 = vld [vmem:[%s1323_s20 + $0x10] sm:$0xff]  ;;  %s1612_s16 = scalar_lea.hbm %s1672_s3, %s959_s21  ;;  %s1219_s5 = smov [#allocation3]  }
  0x1f   : > { %v916_v9 = vld [vmem:[%s1323_s20 + $0x59] sm:$0xff]  ;;  %205 = vst.msk [vmem:[#allocation2 + $0x8] sm:$0xff] %vm203_vm1, %v187_v13  ;;  %v195_v14 = vld [vmem:[%s1323_s20 + $0x48] sm:$0xff]  ;;  %v196_v16 = vld [vmem:[%s1323_s20 + $0x50] sm:$0xff]  ;;  %s1124_s6 = sshll.u32 %s1219_s5, 4  ;;  %s1125_s6 = int_to_ptr.vmem [resolvable:$false] %s1124_s6 }
  0x20   : > { %v925_v10 = vld [vmem:[%s1323_s20 + $0x1a] sm:$0xff]  ;;  %213 = vst.msk [vmem:[#allocation2 + $0x48] sm:$0xff] %vm203_vm1, %v195_v14  ;;  %206 = vst.msk [vmem:[#allocation2 + $0x10] sm:$0xff] %vm203_vm1, %v188_v15  ;;  %v1369_v18 = vld [vmem:[%s1323_s20 + $0x51] sm:$0xff]  ;;  %s1126_s7 = scalar_lea.vmem %s1125_s6, 4352 }
  0x21   : > { %362 = vrot.lane.b32.xlu0 %v907_v5, %s1218_s29  ;;  %259 = vrot.lane.b32.xlu1 %v891_v6, %s1216_s27  ;;  %v933_v11 = vld [vmem:[%s1323_s20 + $0x5a] sm:$0xff]  ;;  %214 = vst.msk [vmem:[#allocation2 + $0x50] sm:$0xff] %vm203_vm1, %v196_v16  ;;  %v926_v22 = vld [vmem:[%s1323_s20 + $0x22] sm:$0xff] }
  0x22   : > { %v186_v12 = vld [vmem:[%s1323_s20] sm:$0xff]  ;;  %v189_v17 = vld [vmem:[%s1323_s20 + $0x18] sm:$0xff]  ;;  %v910_v25 = vld [vmem:[%s1323_s20 + $0x29] sm:$0xff] }
  0x23   : > { %204 = vst.msk [vmem:[#allocation2] sm:$0xff] %vm203_vm1, %v186_v12  ;;  %207 = vst.msk [vmem:[#allocation2 + $0x18] sm:$0xff] %vm203_vm1, %v189_v17  ;;  %v909_v19 = vld [vmem:[%s1323_s20 + $0x21] sm:$0xff]  ;;  %v197_v20 = vld [vmem:[%s1323_s20 + $0x58] sm:$0xff] }
  0x24   : > { %215 = vst.msk [vmem:[#allocation2 + $0x58] sm:$0xff] %vm203_vm1, %v197_v20  ;;  %v917_v21 = vld [vmem:[%s1323_s20 + $0x61] sm:$0xff]  ;;  %v918_v27 = vld [vmem:[%s1323_s20 + $0x69] sm:$0xff]  ;;  %v911_v31 = vld [vmem:[%s1323_s20 + $0x31] sm:$0xff] }
  0x25   : > { %275 = vrot.lane.b32.xlu0 %v1343_v7, %s1216_s27  ;;  %364 = vrot.lane.b32.xlu1 %v908_v8, %s1218_s29  ;;  %v934_v23 = vld [vmem:[%s1323_s20 + $0x62] sm:$0xff]  ;;  %v927_v28 = vld [vmem:[%s1323_s20 + $0x2a] sm:$0xff] }
  0x26   : > { %v190_v24 = vld [vmem:[%s1323_s20 + $0x20] sm:$0xff]  ;;  %v935_v29 = vld [vmem:[%s1323_s20 + $0x6a] sm:$0xff]  ;;  %v928_v34 = vld [vmem:[%s1323_s20 + $0x32] sm:$0xff] }
  0x27   : > { %208 = vst.msk [vmem:[#allocation2 + $0x20] sm:$0xff] %vm203_vm1, %v190_v24  ;;  %v198_v26 = vld [vmem:[%s1323_s20 + $0x60] sm:$0xff]  ;;  %v191_v30 = vld [vmem:[%s1323_s20 + $0x28] sm:$0xff]  ;;  %v919_v33 = vld [vmem:[%s1323_s20 + $0x71] sm:$0xff] }
  0x28   : > { %216 = vst.msk [vmem:[#allocation2 + $0x60] sm:$0xff] %vm203_vm1, %v198_v26  ;;  %209 = vst.msk [vmem:[#allocation2 + $0x28] sm:$0xff] %vm203_vm1, %v191_v30  ;;  %v199_v32 = vld [vmem:[%s1323_s20 + $0x68] sm:$0xff]  ;;  %v936_v35 = vld [vmem:[%s1323_s20 + $0x72] sm:$0xff] }
  0x29   : > { %380 = vrot.lane.b32.xlu0 %v916_v9, %s1218_s29  ;;  %469 = vrot.lane.b32.xlu1 %v925_v10, %s1217_s28  ;;  %217 = vst.msk [vmem:[#allocation2 + $0x68] sm:$0xff] %vm203_vm1, %v199_v32  ;;  %v192_v36 = vld [vmem:[%s1323_s20 + $0x30] sm:$0xff]  ;;  %v912_v37 = vld [vmem:[%s1323_s20 + $0x39] sm:$0xff] }
  0x2a   : > { %210 = vst.msk [vmem:[#allocation2 + $0x30] sm:$0xff] %vm203_vm1, %v192_v36  ;;  %v200_v38 = vld [vmem:[%s1323_s20 + $0x70] sm:$0xff]  ;;  %v920_v39 = vld [vmem:[%s1323_s20 + $0x79] sm:$0xff]  ;;  %v913_v43 = vld [vmem:[%s1323_s20 + $0x41] sm:$0xff] }
  0x2b   : > { %218 = vst.msk [vmem:[#allocation2 + $0x70] sm:$0xff] %vm203_vm1, %v200_v38  ;;  %v929_v40 = vld [vmem:[%s1323_s20 + $0x3a] sm:$0xff]  ;;  %v930_v46 = vld [vmem:[%s1323_s20 + $0x42] sm:$0xff]  ;;  %v931_v51 = vld [vmem:[%s1323_s20 + $0x4a] sm:$0xff] }
  0x2c   : > { %v937_v41 = vld [vmem:[%s1323_s20 + $0x7a] sm:$0xff]  ;;  %v938_v47 = vld [vmem:[%s1323_s20 + $0x82] sm:$0xff]  ;;  %v939_v52 = vld [vmem:[%s1323_s20 + $0x8a] sm:$0xff] }
  0x2d   : > { %485 = vrot.lane.b32.xlu0 %v933_v11, %s1217_s28  ;;  %261 = vrot.lane.b32.xlu1 %v907_v5, %s1216_s27  ;;  %v193_v42 = vld [vmem:[%s1323_s20 + $0x38] sm:$0xff]  ;;  %v921_v45 = vld [vmem:[%s1323_s20 + $0x81] sm:$0xff] }
  0x2e   : > { %211 = vst.msk [vmem:[#allocation2 + $0x38] sm:$0xff] %vm203_vm1, %v193_v42  ;;  %v201_v44 = vld [vmem:[%s1323_s20 + $0x78] sm:$0xff]  ;;  %v194_v48 = vld [vmem:[%s1323_s20 + $0x40] sm:$0xff]  ;;  %v922_v50 = vld [vmem:[%s1323_s20 + $0x89] sm:$0xff] }
  0x2f   : > { %219 = vst.msk [vmem:[#allocation2 + $0x78] sm:$0xff] %vm203_vm1, %v201_v44  ;;  %212 = vst.msk [vmem:[#allocation2 + $0x40] sm:$0xff] %vm203_vm1, %v194_v48  ;;  %v202_v49 = vld [vmem:[%s1323_s20 + $0x80] sm:$0xff]  ;;  %v923_v53 = vld [vmem:[%s1323_s20 + $0x91] sm:$0xff] }
  0x30   : > { %220 = vst.msk [vmem:[#allocation2 + $0x80] sm:$0xff] %vm203_vm1, %v202_v49  ;;  %v932_v54 = vld [vmem:[%s1323_s20 + $0x52] sm:$0xff] }
  0x31   : > { %277 = vrot.lane.b32.xlu0 %v1369_v18, %s1216_s27  ;;  %366 = vrot.lane.b32.xlu1 %v909_v19, %s1218_s29  ;;  %v940_v55 = vld [vmem:[%s1323_s20 + $0x92] sm:$0xff]  ;;  %s797_s20 = sshll.u32 %s1570_s8, 4  ;;  %s1606_s20 = int_to_ptr.vmem [resolvable:$true] %s797_s20 }
  0x32   : > { %p1127_p2 = scmp.lt.s32.totalorder %s1606_s20, %s1125_s6 }
  0x35   : > { %382 = vrot.lane.b32.xlu0 %v917_v21, %s1218_s29  ;;  %471 = vrot.lane.b32.xlu1 %v926_v22, %s1217_s28 }
  0x39   : > { %487 = vrot.lane.b32.xlu0 %v934_v23, %s1217_s28  ;;  %263 = vrot.lane.b32.xlu1 %v908_v8, %s1216_s27 }
  0x3d   : > { %279 = vrot.lane.b32.xlu0 %v916_v9, %s1216_s27  ;;  %368 = vrot.lane.b32.xlu1 %v910_v25, %s1218_s29 }
  0x41   : > { %384 = vrot.lane.b32.xlu0 %v918_v27, %s1218_s29  ;;  %473 = vrot.lane.b32.xlu1 %v927_v28, %s1217_s28 }
  0x45   : > { %489 = vrot.lane.b32.xlu0 %v935_v29, %s1217_s28  ;;  %265 = vrot.lane.b32.xlu1 %v909_v19, %s1216_s27 }
  0x49   : > { %281 = vrot.lane.b32.xlu0 %v917_v21, %s1216_s27  ;;  %370 = vrot.lane.b32.xlu1 %v911_v31, %s1218_s29 }
  0x4d   : > { %386 = vrot.lane.b32.xlu0 %v919_v33, %s1218_s29  ;;  %475 = vrot.lane.b32.xlu1 %v928_v34, %s1217_s28 }
  0x51   : > { %491 = vrot.lane.b32.xlu0 %v936_v35, %s1217_s28  ;;  %267 = vrot.lane.b32.xlu1 %v910_v25, %s1216_s27 }
  0x55   : > { %283 = vrot.lane.b32.xlu0 %v918_v27, %s1216_s27  ;;  %372 = vrot.lane.b32.xlu1 %v912_v37, %s1218_s29 }
  0x59   : > { %388 = vrot.lane.b32.xlu0 %v920_v39, %s1218_s29  ;;  %477 = vrot.lane.b32.xlu1 %v929_v40, %s1217_s28 }
  0x5d   : > { %493 = vrot.lane.b32.xlu0 %v937_v41, %s1217_s28  ;;  %269 = vrot.lane.b32.xlu1 %v911_v31, %s1216_s27 }
  0x61   : > { %285 = vrot.lane.b32.xlu0 %v919_v33, %s1216_s27  ;;  %374 = vrot.lane.b32.xlu1 %v913_v43, %s1218_s29 }
  0x65   : > { %390 = vrot.lane.b32.xlu0 %v921_v45, %s1218_s29  ;;  %479 = vrot.lane.b32.xlu1 %v930_v46, %s1217_s28 }
  0x69   : > { %495 = vrot.lane.b32.xlu0 %v938_v47, %s1217_s28  ;;  %271 = vrot.lane.b32.xlu1 %v912_v37, %s1216_s27 }
  0x6d   : > { %287 = vrot.lane.b32.xlu0 %v920_v39, %s1216_s27  ;;  %376 = vrot.lane.b32.xlu1 %v1343_v7, %s1218_s29 }
  0x71   : > { %392 = vrot.lane.b32.xlu0 %v922_v50, %s1218_s29  ;;  %481 = vrot.lane.b32.xlu1 %v931_v51, %s1217_s28 }
  0x75   : > { %497 = vrot.lane.b32.xlu0 %v939_v52, %s1217_s28  ;;  %273 = vrot.lane.b32.xlu1 %v913_v43, %s1216_s27 }
  0x79   : > { %289 = vrot.lane.b32.xlu0 %v921_v45, %s1216_s27  ;;  %378 = vrot.lane.b32.xlu1 %v1369_v18, %s1218_s29  ;;  %s1617_s27 = scalar_lea.sflag [#allocation4], %s175_s4 }
  0x7d   : > { %394 = vrot.lane.b32.xlu0 %v923_v53, %s1218_s29  ;;  %483 = vrot.lane.b32.xlu1 %v932_v54, %s1217_s28 }
  0x81   : > { %499 = vrot.lane.b32.xlu0 %v940_v55, %s1217_s28  ;;  %s1120_s28 = scalar_lea.vmem %s1606_s20, 2176 }
  0x82   : > { %p1121_p13 = scmp.ne.s32.totalorder %s1606_s20, %s1120_s28  ;;  %p1128_p4 = scmp.lt.s32.totalorder %s1126_s7, %s1120_s28 }
  0x84   : > { %p1122_p0 = pnand %p1121_p13, %p1292_p3  ;;  %p1129_p5 = por %p1128_p4, %p1127_p2 }
  0x86   : > { %p1123_p1 = pneg %p1122_p0 }
  0x88   : > { %p1130_p6 = pnand %p1129_p5, %p1123_p1 }
  0x8f   : > { %v258_v56 = vpop.permute.xlu0 %257  ;;  %v468_v57 = vpop.permute.xlu1 %467 }
  0x90   : > { %309 = vst.msk [vmem:[#allocation2] sm:$0xff] %vm308_vm2, %v258_v56 }
  0x93   : > { %v363_v58 = vpop.permute.xlu0 %362  ;;  %v260_v59 = vpop.permute.xlu1 %259 }
  0x94   : > { %414 = vst.msk [vmem:[#allocation2] sm:$0xff] %vm413_vm3, %v363_v58 }
  0x95   : > { %310 = vst.msk [vmem:[#allocation2 + $0x8] sm:$0xff] %vm308_vm2, %v260_v59 }
  0x96   : > { %519 = vst.msk [vmem:[#allocation2] sm:$0xff] %vm518_vm4, %v468_v57 }
  0x97   : > { %v276_v60 = vpop.permute.xlu0 %275  ;;  %v365_v61 = vpop.permute.xlu1 %364 }
  0x98   : > { %318 = vst.msk [vmem:[#allocation2 + $0x48] sm:$0xff] %vm308_vm2, %v276_v60 }
  0x99   : > { %415 = vst.msk [vmem:[#allocation2 + $0x8] sm:$0xff] %vm413_vm3, %v365_v61  ;;  %v1567_v61 = vld [vmem:[%s1671_s2] ss:$0 sm:$0xff] }
  0x9b   : > { %v381_v62 = vpop.permute.xlu0 %380  ;;  %v470_v63 = vpop.permute.xlu1 %469 }
  0x9c   : > { %423 = vst.msk [vmem:[#allocation2 + $0x48] sm:$0xff] %vm413_vm3, %v381_v62 }
  0x9d   : > { %520 = vst.msk [vmem:[#allocation2 + $0x8] sm:$0xff] %vm518_vm4, %v470_v63  ;;  %v536_v0 = vld [vmem:[#allocation2] sm:$0xff] }
  0x9e   : > { %986 = vmatmul.mubr.msk.f32.vlgmr.msra.gmra.mxu0 %vm562_vm5, %v536_v0 }
  0x9f   : > { %988 = vmatprep.mubr.msk.f32.mxu0 %vm1215_vm0, %v1214_v1  ;;  %v486_v2 = vpop.permute.xlu0 %485  ;;  %v262_v3 = vpop.permute.xlu1 %261 }
  0xa0   : > { %528 = vst.msk [vmem:[#allocation2 + $0x48] sm:$0xff] %vm518_vm4, %v486_v2 }
  0xa1   : > { %311 = vst.msk [vmem:[#allocation2 + $0x10] sm:$0xff] %vm308_vm2, %v262_v3 }
  0xa3   : > { %v278_v4 = vpop.permute.xlu0 %277  ;;  %v367_v5 = vpop.permute.xlu1 %366 }
  0xa4   : > { %v537_v6 = vld [vmem:[#allocation2 + $0x8] sm:$0xff]  ;;  %319 = vst.msk [vmem:[#allocation2 + $0x50] sm:$0xff] %vm308_vm2, %v278_v4 }
  0xa5   : > { %416 = vst.msk [vmem:[#allocation2 + $0x10] sm:$0xff] %vm413_vm3, %v367_v5  ;;  %989 = vmatmul.mubr.msk.f32.gmra.mxu0 %vm562_vm5, %v537_v6 }
  0xa6   : > { %991 = vmatprep.mubr.msk.f32.mxu0 %vm1215_vm0, %v1214_v1 }
  0xa7   : > { %v383_v7 = vpop.permute.xlu0 %382  ;;  %v545_v8 = vld [vmem:[#allocation2 + $0x48] sm:$0xff]  ;;  %v472_v9 = vpop.permute.xlu1 %471 }
  0xa8   : > { %424 = vst.msk [vmem:[#allocation2 + $0x50] sm:$0xff] %vm413_vm3, %v383_v7  ;;  %1013 = vmatmul.mubr.msk.f32.vlgmr.msra.gmra.mxu1 %vm562_vm5, %v545_v8 }
  0xa9   : > { %521 = vst.msk [vmem:[#allocation2 + $0x10] sm:$0xff] %vm518_vm4, %v472_v9  ;;  %1015 = vmatprep.mubr.msk.f32.mxu1 %vm1215_vm0, %v1214_v1 }
  0xab   : > { %v488_v10 = vpop.permute.xlu0 %487  ;;  %v264_v11 = vpop.permute.xlu1 %263 }
  0xac   : > { %529 = vst.msk [vmem:[#allocation2 + $0x50] sm:$0xff] %vm518_vm4, %v488_v10 }
  0xad   : > { %312 = vst.msk [vmem:[#allocation2 + $0x18] sm:$0xff] %vm308_vm2, %v264_v11 }
  0xaf   : > { %v280_v12 = vpop.permute.xlu0 %279  ;;  %v369_v13 = vpop.permute.xlu1 %368 }
  0xb0   : > { %v538_v14 = vld [vmem:[#allocation2 + $0x10] sm:$0xff]  ;;  %320 = vst.msk [vmem:[#allocation2 + $0x58] sm:$0xff] %vm308_vm2, %v280_v12 }
  0xb1   : > { %417 = vst.msk [vmem:[#allocation2 + $0x18] sm:$0xff] %vm413_vm3, %v369_v13  ;;  %992 = vmatmul.mubr.msk.f32.gmra.mxu0 %vm562_vm5, %v538_v14 }
  0xb2   : > { %994 = vmatprep.mubr.msk.f32.mxu0 %vm1215_vm0, %v1214_v1 }
  0xb3   : > { %v385_v15 = vpop.permute.xlu0 %384  ;;  %v546_v16 = vld [vmem:[#allocation2 + $0x50] sm:$0xff]  ;;  %v474_v17 = vpop.permute.xlu1 %473 }
  0xb4   : > { %425 = vst.msk [vmem:[#allocation2 + $0x58] sm:$0xff] %vm413_vm3, %v385_v15  ;;  %1016 = vmatmul.mubr.msk.f32.gmra.mxu1 %vm562_vm5, %v546_v16 }
  0xb5   : > { %522 = vst.msk [vmem:[#allocation2 + $0x18] sm:$0xff] %vm518_vm4, %v474_v17  ;;  %1018 = vmatprep.mubr.msk.f32.mxu1 %vm1215_vm0, %v1214_v1 }
  0xb7   : > { %v490_v18 = vpop.permute.xlu0 %489  ;;  %v266_v19 = vpop.permute.xlu1 %265 }
  0xb8   : > { %530 = vst.msk [vmem:[#allocation2 + $0x58] sm:$0xff] %vm518_vm4, %v490_v18 }
  0xb9   : > { %313 = vst.msk [vmem:[#allocation2 + $0x20] sm:$0xff] %vm308_vm2, %v266_v19 }
  0xbb   : > { %v282_v20 = vpop.permute.xlu0 %281  ;;  %v371_v21 = vpop.permute.xlu1 %370 }
  0xbc   : > { %v539_v22 = vld [vmem:[#allocation2 + $0x18] sm:$0xff]  ;;  %321 = vst.msk [vmem:[#allocation2 + $0x60] sm:$0xff] %vm308_vm2, %v282_v20 }
  0xbd   : > { %418 = vst.msk [vmem:[#allocation2 + $0x20] sm:$0xff] %vm413_vm3, %v371_v21  ;;  %995 = vmatmul.mubr.msk.f32.gmra.mxu0 %vm562_vm5, %v539_v22 }
  0xbe   : > { %997 = vmatprep.mubr.msk.f32.mxu0 %vm1215_vm0, %v1214_v1 }
  0xbf   : > { %v387_v23 = vpop.permute.xlu0 %386  ;;  %v547_v24 = vld [vmem:[#allocation2 + $0x58] sm:$0xff]  ;;  %v476_v25 = vpop.permute.xlu1 %475 }
  0xc0   : > { %426 = vst.msk [vmem:[#allocation2 + $0x60] sm:$0xff] %vm413_vm3, %v387_v23  ;;  %1019 = vmatmul.mubr.msk.f32.gmra.mxu1 %vm562_vm5, %v547_v24 }
  0xc1   : > { %523 = vst.msk [vmem:[#allocation2 + $0x20] sm:$0xff] %vm518_vm4, %v476_v25  ;;  %1021 = vmatprep.mubr.msk.f32.mxu1 %vm1215_vm0, %v1214_v1 }
  0xc3   : > { %v492_v26 = vpop.permute.xlu0 %491  ;;  %v268_v27 = vpop.permute.xlu1 %267 }
  0xc4   : > { %531 = vst.msk [vmem:[#allocation2 + $0x60] sm:$0xff] %vm518_vm4, %v492_v26 }
  0xc5   : > { %314 = vst.msk [vmem:[#allocation2 + $0x28] sm:$0xff] %vm308_vm2, %v268_v27 }
  0xc7   : > { %v284_v28 = vpop.permute.xlu0 %283  ;;  %v373_v29 = vpop.permute.xlu1 %372 }
  0xc8   : > { %v540_v30 = vld [vmem:[#allocation2 + $0x20] sm:$0xff]  ;;  %322 = vst.msk [vmem:[#allocation2 + $0x68] sm:$0xff] %vm308_vm2, %v284_v28 }
  0xc9   : > { %419 = vst.msk [vmem:[#allocation2 + $0x28] sm:$0xff] %vm413_vm3, %v373_v29  ;;  %998 = vmatmul.mubr.msk.f32.gmra.mxu0 %vm562_vm5, %v540_v30 }
  0xca   : > { %1000 = vmatprep.mubr.msk.f32.mxu0 %vm1215_vm0, %v1214_v1 }
  0xcb   : > { %v389_v31 = vpop.permute.xlu0 %388  ;;  %v548_v32 = vld [vmem:[#allocation2 + $0x60] sm:$0xff]  ;;  %v478_v33 = vpop.permute.xlu1 %477 }
  0xcc   : > { %427 = vst.msk [vmem:[#allocation2 + $0x68] sm:$0xff] %vm413_vm3, %v389_v31  ;;  %1022 = vmatmul.mubr.msk.f32.gmra.mxu1 %vm562_vm5, %v548_v32 }
  0xcd   : > { %524 = vst.msk [vmem:[#allocation2 + $0x28] sm:$0xff] %vm518_vm4, %v478_v33  ;;  %1024 = vmatprep.mubr.msk.f32.mxu1 %vm1215_vm0, %v1214_v1 }
  0xcf   : > { %v494_v34 = vpop.permute.xlu0 %493  ;;  %v270_v35 = vpop.permute.xlu1 %269 }
  0xd0   : > { %532 = vst.msk [vmem:[#allocation2 + $0x68] sm:$0xff] %vm518_vm4, %v494_v34 }
  0xd1   : > { %315 = vst.msk [vmem:[#allocation2 + $0x30] sm:$0xff] %vm308_vm2, %v270_v35 }
  0xd3   : > { %v286_v36 = vpop.permute.xlu0 %285  ;;  %v375_v37 = vpop.permute.xlu1 %374 }
  0xd4   : > { %v541_v38 = vld [vmem:[#allocation2 + $0x28] sm:$0xff]  ;;  %323 = vst.msk [vmem:[#allocation2 + $0x70] sm:$0xff] %vm308_vm2, %v286_v36 }
  0xd5   : > { %420 = vst.msk [vmem:[#allocation2 + $0x30] sm:$0xff] %vm413_vm3, %v375_v37  ;;  %1001 = vmatmul.mubr.msk.f32.gmra.mxu0 %vm562_vm5, %v541_v38 }
  0xd6   : > { %1003 = vmatprep.mubr.msk.f32.mxu0 %vm1215_vm0, %v1214_v1 }
  0xd7   : > { %v391_v39 = vpop.permute.xlu0 %390  ;;  %v549_v40 = vld [vmem:[#allocation2 + $0x68] sm:$0xff]  ;;  %v480_v41 = vpop.permute.xlu1 %479 }
  0xd8   : > { %428 = vst.msk [vmem:[#allocation2 + $0x70] sm:$0xff] %vm413_vm3, %v391_v39  ;;  %1025 = vmatmul.mubr.msk.f32.gmra.mxu1 %vm562_vm5, %v549_v40 }
  0xd9   : > { %525 = vst.msk [vmem:[#allocation2 + $0x30] sm:$0xff] %vm518_vm4, %v480_v41  ;;  %1027 = vmatprep.mubr.msk.f32.mxu1 %vm1215_vm0, %v1214_v1 }
  0xdb   : > { %v496_v42 = vpop.permute.xlu0 %495  ;;  %v272_v43 = vpop.permute.xlu1 %271 }
  0xdc   : > { %533 = vst.msk [vmem:[#allocation2 + $0x70] sm:$0xff] %vm518_vm4, %v496_v42 }
  0xdd   : > { %316 = vst.msk [vmem:[#allocation2 + $0x38] sm:$0xff] %vm308_vm2, %v272_v43 }
  0xdf   : > { %v288_v44 = vpop.permute.xlu0 %287  ;;  %v377_v45 = vpop.permute.xlu1 %376 }
  0xe0   : > { %v542_v46 = vld [vmem:[#allocation2 + $0x30] sm:$0xff]  ;;  %324 = vst.msk [vmem:[#allocation2 + $0x78] sm:$0xff] %vm308_vm2, %v288_v44 }
  0xe1   : > { %421 = vst.msk [vmem:[#allocation2 + $0x38] sm:$0xff] %vm413_vm3, %v377_v45  ;;  %1004 = vmatmul.mubr.msk.f32.gmra.mxu0 %vm562_vm5, %v542_v46 }
  0xe2   : > { %1006 = vmatprep.mubr.msk.f32.mxu0 %vm1215_vm0, %v1214_v1 }
  0xe3   : > { %v393_v47 = vpop.permute.xlu0 %392  ;;  %v550_v48 = vld [vmem:[#allocation2 + $0x70] sm:$0xff]  ;;  %v482_v49 = vpop.permute.xlu1 %481 }
  0xe4   : > { %429 = vst.msk [vmem:[#allocation2 + $0x78] sm:$0xff] %vm413_vm3, %v393_v47  ;;  %1028 = vmatmul.mubr.msk.f32.gmra.mxu1 %vm562_vm5, %v550_v48 }
  0xe5   : > { %526 = vst.msk [vmem:[#allocation2 + $0x38] sm:$0xff] %vm518_vm4, %v482_v49  ;;  %1030 = vmatprep.mubr.msk.f32.mxu1 %vm1215_vm0, %v1214_v1 }
  0xe7   : > { %v498_v50 = vpop.permute.xlu0 %497  ;;  %v274_v51 = vpop.permute.xlu1 %273 }
  0xe8   : > { %534 = vst.msk [vmem:[#allocation2 + $0x78] sm:$0xff] %vm518_vm4, %v498_v50 }
  0xe9   : > { %317 = vst.msk [vmem:[#allocation2 + $0x40] sm:$0xff] %vm308_vm2, %v274_v51 }
  0xeb   : > { %v290_v52 = vpop.permute.xlu0 %289  ;;  %v379_v53 = vpop.permute.xlu1 %378 }
  0xec   : > { %v543_v54 = vld [vmem:[#allocation2 + $0x38] sm:$0xff]  ;;  %325 = vst.msk [vmem:[#allocation2 + $0x80] sm:$0xff] %vm308_vm2, %v290_v52 }
  0xed   : > { %422 = vst.msk [vmem:[#allocation2 + $0x40] sm:$0xff] %vm413_vm3, %v379_v53  ;;  %1007 = vmatmul.mubr.msk.f32.gmra.mxu0 %vm562_vm5, %v543_v54 }
  0xee   : > { %1009 = vmatprep.mubr.msk.f32.mxu0 %vm1215_vm0, %v1214_v1 }
  0xef   : > { %v395_v55 = vpop.permute.xlu0 %394  ;;  %v551_v56 = vld [vmem:[#allocation2 + $0x78] sm:$0xff]  ;;  %v484_v57 = vpop.permute.xlu1 %483 }
  0xf0   : > { %430 = vst.msk [vmem:[#allocation2 + $0x80] sm:$0xff] %vm413_vm3, %v395_v55  ;;  %1031 = vmatmul.mubr.msk.f32.gmra.mxu1 %vm562_vm5, %v551_v56 }
  0xf1   : > { %527 = vst.msk [vmem:[#allocation2 + $0x40] sm:$0xff] %vm518_vm4, %v484_v57  ;;  %1033 = vmatprep.mubr.msk.f32.mxu1 %vm1215_vm0, %v1214_v1 }
  0xf3   : > { %v500_v58 = vpop.permute.xlu0 %499 }
  0xf4   : > { %535 = vst.msk [vmem:[#allocation2 + $0x80] sm:$0xff] %vm518_vm4, %v500_v58 }
  0xf8   : > { %v544_v59 = vld [vmem:[#allocation2 + $0x40] sm:$0xff] }
  0xf9   : > { %1010 = vmatmul.mubr.msk.f32.gmra.mxu0 %vm562_vm5, %v544_v59 }
  0xfb   : > { %v552_v60 = vld [vmem:[#allocation2 + $0x80] sm:$0xff] }
  0xfc   : > { %1034 = vmatmul.mubr.msk.f32.gmra.mxu1 %vm562_vm5, %v552_v60 }
 0x15e   : > { %v680_v62 = vpop.f32.mrf.mxu0 }
 0x15f   : > { %v681_v1 = vadd.f32 %v1567_v61, %v680_v62 }
 0x160   : > { %v987_v63 = vpop.f32.mrf.mxu0 }
 0x161   : > { %764 = vst [vmem:[%s1570_s8] sm:$0xff] %v681_v1 }
 0x165   : > { %v685_v0 = vpop.f32.mrf.mxu0 }
 0x166   : > { %v686_v2 = vadd.f32 %v1567_v61, %v685_v0 }
 0x167   : > { %v990_v3 = vpop.f32.mrf.mxu0 }
 0x168   : > { %765 = vst [vmem:[%s1570_s8 + $0x8] sm:$0xff] %v686_v2  ;;  %v725_v4 = vpop.f32.mrf.mxu1 }
 0x169   : > { %v726_v5 = vadd.f32 %v1567_v61, %v725_v4 }
 0x16a   : > { %v1014_v6 = vpop.f32.mrf.mxu1 }
 0x16b   : > { %773 = vst [vmem:[%s1570_s8 + $0x48] sm:$0xff] %v726_v5 }
 0x171   : > { %v690_v7 = vpop.f32.mrf.mxu0 }
 0x172   : > { %v691_v8 = vadd.f32 %v1567_v61, %v690_v7 }
 0x173   : > { %v993_v9 = vpop.f32.mrf.mxu0 }
 0x174   : > { %766 = vst [vmem:[%s1570_s8 + $0x10] sm:$0xff] %v691_v8  ;;  %v730_v10 = vpop.f32.mrf.mxu1 }
 0x175   : > { %v731_v11 = vadd.f32 %v1567_v61, %v730_v10 }
 0x176   : > { %v1017_v12 = vpop.f32.mrf.mxu1 }
 0x177   : > { %774 = vst [vmem:[%s1570_s8 + $0x50] sm:$0xff] %v731_v11 }
 0x17d   : > { %v695_v13 = vpop.f32.mrf.mxu0 }
 0x17e   : > { %v696_v14 = vadd.f32 %v1567_v61, %v695_v13 }
 0x17f   : > { %v996_v15 = vpop.f32.mrf.mxu0 }
 0x180   : > { %767 = vst [vmem:[%s1570_s8 + $0x18] sm:$0xff] %v696_v14  ;;  %v735_v16 = vpop.f32.mrf.mxu1 }
 0x181   : > { %v736_v17 = vadd.f32 %v1567_v61, %v735_v16 }
 0x182   : > { %v1020_v18 = vpop.f32.mrf.mxu1 }
 0x183   : > { %775 = vst [vmem:[%s1570_s8 + $0x58] sm:$0xff] %v736_v17 }
 0x189   : > { %v700_v19 = vpop.f32.mrf.mxu0 }
 0x18a   : > { %v701_v20 = vadd.f32 %v1567_v61, %v700_v19 }
 0x18b   : > { %v999_v21 = vpop.f32.mrf.mxu0 }
 0x18c   : > { %768 = vst [vmem:[%s1570_s8 + $0x20] sm:$0xff] %v701_v20  ;;  %v740_v22 = vpop.f32.mrf.mxu1 }
 0x18d   : > { %v741_v23 = vadd.f32 %v1567_v61, %v740_v22 }
 0x18e   : > { %v1023_v24 = vpop.f32.mrf.mxu1 }
 0x18f   : > { %776 = vst [vmem:[%s1570_s8 + $0x60] sm:$0xff] %v741_v23 }
 0x195   : > { %v705_v25 = vpop.f32.mrf.mxu0 }
 0x196   : > { %v706_v26 = vadd.f32 %v1567_v61, %v705_v25 }
 0x197   : > { %v1002_v27 = vpop.f32.mrf.mxu0 }
 0x198   : > { %769 = vst [vmem:[%s1570_s8 + $0x28] sm:$0xff] %v706_v26  ;;  %v745_v28 = vpop.f32.mrf.mxu1 }
 0x199   : > { %v746_v29 = vadd.f32 %v1567_v61, %v745_v28 }
 0x19a   : > { %v1026_v30 = vpop.f32.mrf.mxu1 }
 0x19b   : > { %777 = vst [vmem:[%s1570_s8 + $0x68] sm:$0xff] %v746_v29 }
 0x1a1   : > { %v710_v31 = vpop.f32.mrf.mxu0 }
 0x1a2   : > { %v711_v32 = vadd.f32 %v1567_v61, %v710_v31 }
 0x1a3   : > { %v1005_v33 = vpop.f32.mrf.mxu0 }
 0x1a4   : > { %770 = vst [vmem:[%s1570_s8 + $0x30] sm:$0xff] %v711_v32  ;;  %v750_v34 = vpop.f32.mrf.mxu1 }
 0x1a5   : > { %v751_v35 = vadd.f32 %v1567_v61, %v750_v34 }
 0x1a6   : > { %v1029_v36 = vpop.f32.mrf.mxu1 }
 0x1a7   : > { %778 = vst [vmem:[%s1570_s8 + $0x70] sm:$0xff] %v751_v35 }
 0x1ad   : > { %v715_v37 = vpop.f32.mrf.mxu0 }
 0x1ae   : > { %v716_v38 = vadd.f32 %v1567_v61, %v715_v37 }
 0x1af   : > { %v1008_v39 = vpop.f32.mrf.mxu0 }
 0x1b0   : > { %771 = vst [vmem:[%s1570_s8 + $0x38] sm:$0xff] %v716_v38  ;;  %v755_v40 = vpop.f32.mrf.mxu1 }
 0x1b1   : > { %v756_v41 = vadd.f32 %v1567_v61, %v755_v40 }
 0x1b2   : > { %v1032_v42 = vpop.f32.mrf.mxu1 }
 0x1b3   : > { %779 = vst [vmem:[%s1570_s8 + $0x78] sm:$0xff] %v756_v41 }
 0x1b9   : > { %v720_v43 = vpop.f32.mrf.mxu0 }
 0x1ba   : > { %v721_v44 = vadd.f32 %v1567_v61, %v720_v43 }
 0x1bb   : > { %v1011_v45 = vpop.f32.mrf.mxu0 }
 0x1bc   : > { %772 = vst [vmem:[%s1570_s8 + $0x40] sm:$0xff] %v721_v44  ;;  %v760_v46 = vpop.f32.mrf.mxu1 }
 0x1bd   : > { %v761_v47 = vadd.f32 %v1567_v61, %v760_v46 }
 0x1be   : > { %v1035_v48 = vpop.f32.mrf.mxu1 }
 0x1bf   : > { %780 = vst [vmem:[%s1570_s8 + $0x80] sm:$0xff] %v761_v47 }
 0x1c0   : > { %1133 = shalt.err (!%p1130_p6)
}
 0x1c1   : > { %s1134_s4 = scalar_lea.hbm %s1612_s16, 2176  ;;  %s1138_s10 = scalar_lea.hbm %s1672_s3, 8704 }
 0x1c2   : > { %p1135_p7 = scmp.ne.s32.totalorder %s1612_s16, %s1134_s4  ;;  %p1139_p11 = scmp.lt.s32.totalorder %s1612_s16, %s1672_s3 }
 0x1c3   : > { %p1140_p12 = scmp.lt.s32.totalorder %s1138_s10, %s1134_s4 }
 0x1c4   : > { %p1136_p9 = pnand %p1135_p7, %p1292_p3 }
 0x1c5   : > { %p1141_p13 = por %p1140_p12, %p1139_p11 }
 0x1c6   : > { %p1137_p10 = pneg %p1136_p9 }
 0x1c8   : > { %p1142_p0 = pnand %p1141_p13, %p1137_p10 }
 0x1ca   : > { %1145 = shalt.err (!%p1142_p0)
}
 0x1cb   : > { %s1220_s15 = smov 128  }
 0x1cc   : > { %1043 = dma.vmem_to_hbm [thread:$0]  (%p1292_p3), %s1606_s20, 2176, %s1612_s16, %s1617_s27, %s1220_s15, %s1220_s15, %s1218_s29  }
 0x1cd PF: > { %p1049_p1 = scmp.ge.s32.totalorder %s1212_s19, 2  ;;  %s812_s24 = sand.u32 1, %s1184_s12  }
 0x1ce   : > { %s813_s28 = scalar_lea.sflag [#allocation4], %s812_s24 }
 0x1cf   : > { %p1046_p2 = pnand %p1049_p1, %p1301_p8 }
 0x1d1   : > { %p1047_p4 = pneg %p1046_p2 }
 0x1d3   : > { %1179 = dma.done.wait (%p1047_p4), %s813_s28, 2176  }
 0x1d4   : > { %1181 = vsyncadd (%p1047_p4), %s813_s28, 4294965120  ;;  %s16_s19 = sadd.s32 1, %s1212_s19   ;;  %s1675_s12 = smov %s1188_s13 }
 0x1d5   : > { %p13_p5 = scmp.ge.s32.totalorder %s16_s19, 6   ;;  %s1676_s13 = smov %s1192_s14 }
 0x1d6   : > { %s1677_s14 = smov %s1310_s30  ;;  %s1678_s15 = smov %s1204_s17 }
 0x1d7   : > { %s1679_s16 = smov %s1208_s18  ;;  %s1680_s17 = smov %s1683_s22 }
 0x1d8   : > { %s1681_s18 = smov %s1687_s23  ;;  %15 = sbr.rel (!%p13_p5) target bundleno = 5 (0x5), region = 71 }
 0x1dd   :  { %818 = vsyncpa [#allocation4], 1 }
 0x1de   :  { %820 = vsyncpa [#allocation4 + $0x1], 1 }

</bundles_post_ra>
